<compile_context>
chip_gen: v7x
topology: tpu7x:2x2x1
jax: 0.10.0
libtpu: 0.0.40
codegen_flags: <defaults>
</compile_context>

<pallas_src>
import functools

import numpy as np
import jax
import jax.numpy as jnp
from jax import lax
from jax.experimental import pallas as pl
from jax.experimental.pallas import tpu as pltpu


# ---------------------------------------------------------------------------
# Shared block compute: masked local attention of a (GB, e) query block
# against a (KW, e) key/value slab whose first bucket lies `shift_b` buckets
# before the block's first query bucket.
# ---------------------------------------------------------------------------
def _attend_block(q, k, v, *, bs, look_backward, look_forward, causal,
                  scale, mask_value, shift_b, mxu_dtype, out_dtype):
    GB = q.shape[0]
    KW = k.shape[0]

    q = q * scale                              # fold 1/sqrt(e) into Q once
    if mxu_dtype is not None and q.dtype != mxu_dtype:
        qm, km = q.astype(mxu_dtype), k.astype(mxu_dtype)
    else:
        qm, km = q, k

    # (GB, e) x (KW, e) contracting the feature dim -> (GB, KW); no transpose.
    dots = lax.dot_general(qm, km,
                           dimension_numbers=(((1,), (1,)), ((), ())),
                           preferred_element_type=jnp.float32)

    # Position masks from cheap row/column index vectors.
    qi = lax.broadcasted_iota(jnp.int32, (GB, 1), 0)   # query slot in group
    kj = lax.broadcasted_iota(jnp.int32, (1, KW), 1)   # key slot in slab
    if bs & (bs - 1) == 0:                             # power-of-two -> shifts
        sh = bs.bit_length() - 1
        qb = (qi >> sh) + shift_b                      # slab-relative buckets
        kb = kj >> sh
    else:
        qb = qi // bs + shift_b
        kb = kj // bs
    keep = (kb >= qb - look_backward) & (kb <= qb + look_forward)
    if causal:
        # q_pos >= k_pos  <=>  kj <= qi + shift_b*bs
        keep = keep & (kj <= qi + shift_b * bs)
    dots = jnp.where(keep, dots, mask_value)

    # Softmax: exp / row-sum / EUP reciprocal of the (GB,1) denominator.
    m = jnp.max(dots, axis=-1, keepdims=True)
    p = jnp.exp(dots - m)
    # TODO(synk): on v6e/v7x the exp could be computed in bf16 if the single
    # EUP slot ever becomes the bottleneck (not on v5e: no bf16 EUP).
    l = jnp.sum(p, axis=-1, keepdims=True)
    attn = p * pl.reciprocal(l, approx=True)

    pv_dtype = mxu_dtype if mxu_dtype is not None else v.dtype
    out = jnp.dot(attn.astype(pv_dtype), v.astype(pv_dtype),
                  preferred_element_type=jnp.float32)
    return out.astype(out_dtype)


# ---------------------------------------------------------------------------
# Kernel A: full K/V sequence of one batch*head resident in VMEM.
# ---------------------------------------------------------------------------
def _local_attn_resident_kernel(q_ref, k_ref, v_ref, o_ref, *, bs, G, buckets,
                                KB, look_backward, look_forward, causal,
                                scale, mask_value, mxu_dtype):
    g = pl.program_id(1)                        # bucket-group index
    KW = KB * bs
    start_b = jnp.clip(g * G - look_backward, 0, buckets - KB)
    shift_b = g * G - start_b                   # clamp shift, folded into mask
    start = pl.multiple_of(start_b * bs, bs)    # bucket-aligned slab start

    k = k_ref[pl.ds(start, KW), :]
    v = v_ref[pl.ds(start, KW), :]
    o_ref[...] = _attend_block(
        q_ref[...], k, v, bs=bs, look_backward=look_backward,
        look_forward=look_forward, causal=causal, scale=scale,
        mask_value=mask_value, shift_b=shift_b, mxu_dtype=mxu_dtype,
        out_dtype=o_ref.dtype)


# ---------------------------------------------------------------------------
# Kernel B (long sequences): K/V stay in HBM, DMA only the per-group slab.
# ---------------------------------------------------------------------------
def _local_attn_slab_kernel(q_ref, k_hbm, v_hbm, o_ref, kbuf, vbuf, sem, *,
                            bs, G, buckets, KB, look_backward, look_forward,
                            causal, scale, mask_value, mxu_dtype):
    i = pl.program_id(0)                        # batch*head index
    g = pl.program_id(1)                        # bucket-group index
    KW = KB * bs
    start_b = jnp.clip(g * G - look_backward, 0, buckets - KB)
    shift_b = g * G - start_b
    start = pl.multiple_of(start_b * bs, bs)

    ck = pltpu.make_async_copy(k_hbm.at[i, pl.ds(start, KW), :], kbuf, sem.at[0])
    cv = pltpu.make_async_copy(v_hbm.at[i, pl.ds(start, KW), :], vbuf, sem.at[1])
    ck.start()
    cv.start()
    q = q_ref[...]                              # overlap Q load with slab DMAs
    ck.wait()
    cv.wait()
    # TODO(synk): a cross-step double-buffered prefetch of slab g+1 would hide
    # the slab DMA completely; consecutive slabs overlap by (win-1)*bs rows.
    o_ref[...] = _attend_block(
        q, kbuf[...], vbuf[...], bs=bs, look_backward=look_backward,
        look_forward=look_forward, causal=causal, scale=scale,
        mask_value=mask_value, shift_b=shift_b, mxu_dtype=mxu_dtype,
        out_dtype=o_ref.dtype)


# ---------------------------------------------------------------------------
# Group-size heuristic: minimize steps * (GB * lane-padded-KW + overhead),
# i.e. target a key slab of ~128-256 lanes instead of ~256 query rows.
# ---------------------------------------------------------------------------
def _choose_group(buckets, bs, win, *, overhead_elems=24576, max_rows=1024):
    best_g, best_cost = None, None
    for G in range(1, buckets + 1):
        if buckets % G:
            continue
        GB = G * bs
        if GB % 8 and G != buckets:          # (8,128) BlockSpec legality
            continue
        if GB > max_rows and G != buckets:   # keep streamed Q/O tiles sane
            continue
        KB = min(G + win - 1, buckets)
        kw_pad = -(-(KB * bs) // 128) * 128  # lanes pad to multiples of 128
        steps = buckets // G
        cost = steps * (GB * kw_pad + overhead_elems)
        if best_cost is None or cost < best_cost:
            best_g, best_cost = G, cost
    return best_g


def local_attention(q, k, v, *, bucket_size, causal=False, look_backward=1,
                    look_forward=0, group_buckets=None, mxu_dtype=None,
                    kv_mode="auto"):
    """Pallas port of LocalAttention.forward (q_mask / kv_mask = None path).

    kv_mode: "auto" | "resident" | "slab".  mxu_dtype: e.g. jnp.bfloat16 to
    run the two matmuls at full MXU rate on v6e/v7x (f32 accumulation).
    """
    assert not (causal and look_forward > 0), "you cannot look forward if causal"
    b, h, t, e = q.shape
    assert t % bucket_size == 0
    buckets = t // bucket_size
    bh = b * h
    win = look_backward + look_forward + 1

    G = group_buckets if group_buckets is not None else _choose_group(
        buckets, bucket_size, win)
    assert buckets % G == 0
    GB = G * bucket_size
    assert GB % 8 == 0 or G == buckets
    KB = min(G + win - 1, buckets)
    KW = KB * bucket_size
    num_groups = buckets // G

    qr = q.reshape(bh, t, e)
    kr = k.reshape(bh, t, e)
    vr = v.reshape(bh, t, e)

    mask_value = float(-jnp.finfo(q.dtype).max)
    scale = float(e) ** -0.5

    kw_common = dict(bs=bucket_size, G=G, buckets=buckets, KB=KB,
                     look_backward=look_backward, look_forward=look_forward,
                     causal=causal, scale=scale, mask_value=mask_value,
                     mxu_dtype=mxu_dtype)

    # --- VMEM budgeting (generation aware) ---------------------------------
    dbytes = jnp.dtype(q.dtype).itemsize
    kw_pad = -(-KW // 128) * 128
    q_stream = 2 * 2 * GB * e * dbytes          # Q + O, double-buffered
    interm = 8 * GB * kw_pad * 4                # f32 score temporaries (est.)
    slack = 2 << 20
    try:
        phys_vmem = int(pltpu.get_tpu_info().vmem_capacity_bytes)
    except Exception:
        phys_vmem = 128 << 20
    vmem_cap = int(phys_vmem * 0.85)            # headroom for compiler scratch

    def resident_need(n_kv_bufs):
        return n_kv_bufs * 2 * t * e * dbytes + q_stream + interm + slack

    def compiler_params(need):
        return pltpu.CompilerParams(
            dimension_semantics=("parallel", "parallel"),
            vmem_limit_bytes=int(min(max(need, 32 << 20), vmem_cap)))

    q_spec = pl.BlockSpec((None, GB, e), lambda i, g: (i, g, 0))
    o_spec = pl.BlockSpec((None, GB, e), lambda i, g: (i, g, 0))

    def run_resident(single_buffer_kv):
        kv_kwargs = {}
        if single_buffer_kv and hasattr(pl, "Buffered"):
            # K/V block index is constant across the group axis -> a second
            # pipeline buffer would only prefetch the next head's K/V.
            kv_kwargs["pipeline_mode"] = pl.Buffered(1)
        kv_spec = pl.BlockSpec((None, t, e), lambda i, g: (i, 0, 0), **kv_kwargs)
        kernel = functools.partial(_local_attn_resident_kernel, **kw_common)
        return pl.pallas_call(
            kernel,
            out_shape=jax.ShapeDtypeStruct((bh, t, e), q.dtype),
            grid_spec=pltpu.PrefetchScalarGridSpec(
                num_scalar_prefetch=0,
                grid=(bh, num_groups),
                in_specs=[q_spec, kv_spec, kv_spec],
                out_specs=o_spec),
            compiler_params=compiler_params(
                resident_need(1 if single_buffer_kv else 2)),
        )(qr, kr, vr)

    def run_slab():
        kernel = functools.partial(_local_attn_slab_kernel, **kw_common)
        return pl.pallas_call(
            kernel,
            out_shape=jax.ShapeDtypeStruct((bh, t, e), q.dtype),
            grid_spec=pltpu.PrefetchScalarGridSpec(
                num_scalar_prefetch=0,
                grid=(bh, num_groups),
                in_specs=[q_spec,
                          pl.BlockSpec(memory_space=pl.ANY),
                          pl.BlockSpec(memory_space=pl.ANY)],
                out_specs=o_spec,
                scratch_shapes=[pltpu.VMEM((KW, e), q.dtype),
                                pltpu.VMEM((KW, e), q.dtype),
                                pltpu.SemaphoreType.DMA((2,))]),
            compiler_params=compiler_params(
                2 * KW * e * dbytes + q_stream + interm + slack),
        )(qr, kr, vr)

    if kv_mode == "slab":
        out = run_slab()
    elif kv_mode == "resident" or resident_need(2) <= vmem_cap:
        try:
            out = run_resident(single_buffer_kv=True)
        except Exception:
            out = run_resident(single_buffer_kv=False)
    elif resident_need(1) <= vmem_cap:
        try:
            out = run_resident(single_buffer_kv=True)
        except Exception:
            out = run_slab()
    else:
        out = run_slab()

    # TODO(synk): q_mask / kv_mask boolean-sequence-mask path not implemented
    # (reference default is None for both); dropout=0.0 path only.
    # TODO(synk): if e < 128 and stores ever profile as the bottleneck, present
    # a lane-dense 128-wide output slab at the wrapper instead of (GB, e).
    return out.reshape(b, h, t, e)


# ---------------------------------------------------------------------------
# Pure-JAX replica of the PyTorch forward (correctness reference).
# ---------------------------------------------------------------------------
def _reference(q, k, v, *, bucket_size, causal, look_backward, look_forward):
    b, h, t, e = q.shape
    buckets = t // bucket_size
    bh = b * h
    win = look_backward + look_forward + 1

    ticker = jnp.arange(t, dtype=q.dtype)[None, :]
    b_t = ticker.reshape(1, buckets, bucket_size)

    def bucket_fn(x):
        return x.reshape(bh, buckets, bucket_size, e)

    bq, bk, bv = map(bucket_fn, (q.reshape(bh, t, e), k.reshape(bh, t, e),
                                 v.reshape(bh, t, e)))

    def look_around(x, pad_value=-1.0, dim=2):
        pads = [(0, 0)] * x.ndim
        pads[1] = (look_backward, look_forward)
        padded = jnp.pad(x, pads, constant_values=pad_value)
        return jnp.concatenate([padded[:, i:i + buckets] for i in range(win)],
                               axis=dim)

    bkw = look_around(bk)
    bvw = look_around(bv)
    bq_t = b_t
    bq_k = look_around(b_t)

    dots = jnp.einsum('bhie,bhje->bhij', bq, bkw) * (e ** -0.5)
    mask_value = -jnp.finfo(dots.dtype).max
    if causal:
        dots = jnp.where(bq_t[:, :, :, None] < bq_k[:, :, None, :], mask_value, dots)
    dots = jnp.where(bq_k[:, :, None, :] == -1, mask_value, dots)
    attn = jax.nn.softmax(dots, axis=-1)
    out = jnp.einsum('bhij,bhje->bhie', attn, bvw)
    return out.reshape(b, h, t, e)


if __name__ == "__main__":
    key = jax.random.PRNGKey(0)
    kq, kk, kv_ = jax.random.split(key, 3)

    b, h, t, e = 2, 2, 32, 32
    bucket_size = 8

    q = jax.random.normal(kq, (b, h, t, e), dtype=jnp.float32)
    k = jax.random.normal(kk, (b, h, t, e), dtype=jnp.float32)
    v = jax.random.normal(kv_, (b, h, t, e), dtype=jnp.float32)

    configs = [
        # (causal, lb, lf, group_buckets, kv_mode, mxu_dtype, tol)
        (False, 1, 0, None, "auto", None,          5e-3),  # heuristic G, resident K/V
        (True,  1, 0, 1,    "auto", None,          5e-3),  # causal, clamp/shift path
        (False, 1, 1, 2,    "slab", None,          5e-3),  # look-forward + manual slab DMA
        (False, 1, 0, None, "auto", jnp.bfloat16,  5e-2),  # bf16-MXU fast path
    ]
    for causal, lb, lf, gbk, mode, mdt, tol in configs:
        out = local_attention(q, k, v, bucket_size=bucket_size, causal=causal,
                              look_backward=lb, look_forward=lf,
                              group_buckets=gbk, kv_mode=mode, mxu_dtype=mdt)
        jax.block_until_ready(out)
        ref = _reference(q, k, v, bucket_size=bucket_size, causal=causal,
                         look_backward=lb, look_forward=lf)
        np.testing.assert_allclose(np.asarray(out), np.asarray(ref),
                                   rtol=tol, atol=tol)

    print("KERNEL_OK")
</pallas_src>

<mosaic_0001>
module attributes {stable_mosaic.version = 11 : i64} {
  func.func @_local_attn_resident_kernel(%arg0: i32, %arg1: i32, %arg2: memref<1x32x32xf32, #tpu.memory_space<vmem>>, %arg3: memref<1x32x32xf32, #tpu.memory_space<vmem>>, %arg4: memref<1x32x32xf32, #tpu.memory_space<vmem>>, %arg5: memref<1x32x32xf32, #tpu.memory_space<vmem>>) attributes {dimension_semantics = [#tpu.dimension_semantics<parallel>, #tpu.dimension_semantics<parallel>], iteration_bounds = array<i64: 4, 1>, scalar_prefetch = 0 : i64, scratch_operands = 0 : i64, tpu.core_type = #tpu.core_type<tc>, window_params = [{transform_indices = @transform_0, window_bounds = array<i64: 1, 32, 32>}, {pipeline_mode = #tpu.pipeline_mode<synchronous>, transform_indices = @transform_1, window_bounds = array<i64: 1, 32, 32>}, {pipeline_mode = #tpu.pipeline_mode<synchronous>, transform_indices = @transform_2, window_bounds = array<i64: 1, 32, 32>}, {transform_indices = @transform_3, window_bounds = array<i64: 1, 32, 32>}]} {
    %c4_i32 = arith.constant 4 : i32
    %0 = arith.muli %arg1, %c4_i32 : i32
    %c1_i32 = arith.constant 1 : i32
    %1 = arith.subi %0, %c1_i32 : i32
    %c0_i32 = arith.constant 0 : i32
    %c0_i32_0 = arith.constant 0 : i32
    %2 = arith.maxsi %c0_i32, %1 : i32
    %3 = arith.minsi %c0_i32_0, %2 : i32
    %c4_i32_1 = arith.constant 4 : i32
    %4 = arith.muli %arg1, %c4_i32_1 : i32
    %5 = arith.subi %4, %3 : i32
    %c8_i32 = arith.constant 8 : i32
    %6 = arith.muli %3, %c8_i32 : i32
    %7 = tpu.assume_multiple %6, 8 : i32
    %c0 = arith.constant 0 : index
    %8 = arith.index_cast %7 : i32 to index
    %c0_2 = arith.constant 0 : index
    %9 = vector.load %arg3[%c0, %8, %c0_2] : memref<1x32x32xf32, #tpu.memory_space<vmem>>, vector<1x32x32xf32>
    %10 = vector.shape_cast %9 : vector<1x32x32xf32> to vector<32x32xf32>
    %c0_3 = arith.constant 0 : index
    %11 = arith.index_cast %7 : i32 to index
    %c0_4 = arith.constant 0 : index
    %12 = vector.load %arg4[%c0_3, %11, %c0_4] : memref<1x32x32xf32, #tpu.memory_space<vmem>>, vector<1x32x32xf32>
    %13 = vector.shape_cast %12 : vector<1x32x32xf32> to vector<32x32xf32>
    %c0_5 = arith.constant 0 : index
    %c0_6 = arith.constant 0 : index
    %c0_7 = arith.constant 0 : index
    %14 = vector.load %arg2[%c0_5, %c0_6, %c0_7] : memref<1x32x32xf32, #tpu.memory_space<vmem>>, vector<1x32x32xf32>
    %15 = vector.shape_cast %14 : vector<1x32x32xf32> to vector<32x32xf32>
    %cst = arith.constant 0.176776692 : f32
    %16 = vector.broadcast %cst : f32 to vector<32x32xf32>
    %17 = arith.mulf %15, %16 : vector<32x32xf32>
    %cst_8 = arith.constant dense<0.000000e+00> : vector<32x32xf32>
    %18 = tpu.matmul %17, %10, %cst_8 {dimension_numbers = #tpu.dot_dimension_numbers<[1], [1], [0], [0], [0, 0, 1, 0], [], []>} : vector<32x32xf32>, vector<32x32xf32>, vector<32x32xf32> -> vector<32x32xf32>
    %19 = tpu.iota {dimensions = array<i32: 0>} : vector<32x1xi32>
    %20 = tpu.iota {dimensions = array<i32: 1>} : vector<1x32xi32>
    %c3_i32 = arith.constant 3 : i32
    %21 = vector.broadcast %c3_i32 : i32 to vector<32x1xi32>
    %22 = arith.shrsi %19, %21 : vector<32x1xi32>
    %23 = vector.broadcast %5 : i32 to vector<32x1xi32>
    %24 = arith.addi %22, %23 : vector<32x1xi32>
    %c3_i32_9 = arith.constant 3 : i32
    %25 = vector.broadcast %c3_i32_9 : i32 to vector<1x32xi32>
    %26 = arith.shrsi %20, %25 : vector<1x32xi32>
    %c1_i32_10 = arith.constant 1 : i32
    %27 = vector.broadcast %c1_i32_10 : i32 to vector<32x1xi32>
    %28 = arith.subi %24, %27 : vector<32x1xi32>
    %29 = vector.broadcast %26 : vector<1x32xi32> to vector<32x32xi32>
    %30 = vector.broadcast %28 : vector<32x1xi32> to vector<32x32xi32>
    %31 = arith.cmpi sge, %29, %30 : vector<32x32xi32>
    %c0_i32_11 = arith.constant 0 : i32
    %32 = vector.broadcast %c0_i32_11 : i32 to vector<32x1xi32>
    %33 = arith.addi %24, %32 : vector<32x1xi32>
    %34 = vector.broadcast %26 : vector<1x32xi32> to vector<32x32xi32>
    %35 = vector.broadcast %33 : vector<32x1xi32> to vector<32x32xi32>
    %36 = arith.cmpi sle, %34, %35 : vector<32x32xi32>
    %37 = arith.andi %31, %36 : vector<32x32xi1>
    %cst_12 = arith.constant -3.40282347E+38 : f32
    %38 = vector.broadcast %cst_12 : f32 to vector<32x32xf32>
    %39 = arith.select %37, %18, %38 : vector<32x32xi1>, vector<32x32xf32>
    %cst_13 = arith.constant dense<0xFF800000> : vector<32xf32>
    %40 = vector.multi_reduction <maximumf>, %39, %cst_13 [1] : vector<32x32xf32> to vector<32xf32>
    %41 = vector.shape_cast %40 : vector<32xf32> to vector<32x1xf32>
    %42 = vector.broadcast %41 : vector<32x1xf32> to vector<32x32xf32>
    %43 = arith.subf %39, %42 : vector<32x32xf32>
    %44 = math.exp %43 : vector<32x32xf32>
    %cst_14 = arith.constant dense<0.000000e+00> : vector<32xf32>
    %45 = vector.multi_reduction <add>, %44, %cst_14 [1] : vector<32x32xf32> to vector<32xf32>
    %46 = vector.shape_cast %45 : vector<32xf32> to vector<32x1xf32>
    %47 = tpu.reciprocal %46 {approx = true} : vector<32x1xf32> -> vector<32x1xf32>
    %48 = vector.broadcast %47 : vector<32x1xf32> to vector<32x32xf32>
    %49 = arith.mulf %44, %48 : vector<32x32xf32>
    %cst_15 = arith.constant dense<0.000000e+00> : vector<32x32xf32>
    %50 = tpu.matmul %49, %13, %cst_15 {dimension_numbers = #tpu.dot_dimension_numbers<[1], [0], [0], [1], [0, 0, 1, 1], [], []>} : vector<32x32xf32>, vector<32x32xf32>, vector<32x32xf32> -> vector<32x32xf32>
    %c0_16 = arith.constant 0 : index
    %c0_17 = arith.constant 0 : index
    %c0_18 = arith.constant 0 : index
    %51 = vector.load %arg5[%c0_16, %c0_17, %c0_18] : memref<1x32x32xf32, #tpu.memory_space<vmem>>, vector<1x32x32xf32>
    %52 = vector.shape_cast %51 : vector<1x32x32xf32> to vector<32x32xf32>
    %53 = vector.shape_cast %50 : vector<32x32xf32> to vector<1x32x32xf32>
    tpu.vector_store %arg5[%c0_16, %c0_17, %c0_18], %53 {strides = array<i32>} : memref<1x32x32xf32, #tpu.memory_space<vmem>>, vector<1x32x32xf32>,
    return
  }
  func.func @transform_0(%arg0: i32, %arg1: i32) -> (i32, i32, i32) {
    %c0_i32 = arith.constant 0 : i32
    %c0_i32_0 = arith.constant 0 : i32
    return %arg0, %arg1, %c0_i32 : i32, i32, i32
  }
  func.func @transform_1(%arg0: i32, %arg1: i32) -> (i32, i32, i32) {
    %c0_i32 = arith.constant 0 : i32
    %c0_i32_0 = arith.constant 0 : i32
    %c0_i32_1 = arith.constant 0 : i32
    return %arg0, %c0_i32, %c0_i32_0 : i32, i32, i32
  }
  func.func @transform_2(%arg0: i32, %arg1: i32) -> (i32, i32, i32) {
    %c0_i32 = arith.constant 0 : i32
    %c0_i32_0 = arith.constant 0 : i32
    %c0_i32_1 = arith.constant 0 : i32
    return %arg0, %c0_i32, %c0_i32_0 : i32, i32, i32
  }
  func.func @transform_3(%arg0: i32, %arg1: i32) -> (i32, i32, i32) {
    %c0_i32 = arith.constant 0 : i32
    %c0_i32_0 = arith.constant 0 : i32
    return %arg0, %arg1, %c0_i32 : i32, i32, i32
  }
}

module attributes {stable_mosaic.version = 11 : i64} {
  func.func @_local_attn_resident_kernel(%arg0: i32, %arg1: i32, %arg2: memref<1x32x32xf32, #tpu.memory_space<vmem>>, %arg3: memref<1x32x32xf32, #tpu.memory_space<vmem>>, %arg4: memref<1x32x32xf32, #tpu.memory_space<vmem>>, %arg5: memref<1x32x32xf32, #tpu.memory_space<vmem>>) attributes {dimension_semantics = [#tpu.dimension_semantics<parallel>, #tpu.dimension_semantics<parallel>], iteration_bounds = array<i64: 4, 1>, scalar_prefetch = 0 : i64, scratch_operands = 0 : i64, tpu.core_type = #tpu.core_type<tc>, window_params = [{transform_indices = @transform_0, window_bounds = array<i64: 1, 32, 32>}, {transform_indices = @transform_1, window_bounds = array<i64: 1, 32, 32>}, {transform_indices = @transform_2, window_bounds = array<i64: 1, 32, 32>}, {transform_indices = @transform_3, window_bounds = array<i64: 1, 32, 32>}]} {
    %c4_i32 = arith.constant 4 : i32
    %0 = arith.muli %arg1, %c4_i32 : i32
    %c1_i32 = arith.constant 1 : i32
    %1 = arith.subi %0, %c1_i32 : i32
    %c0_i32 = arith.constant 0 : i32
    %c0_i32_0 = arith.constant 0 : i32
    %2 = arith.maxsi %c0_i32, %1 : i32
    %3 = arith.minsi %c0_i32_0, %2 : i32
    %c4_i32_1 = arith.constant 4 : i32
    %4 = arith.muli %arg1, %c4_i32_1 : i32
    %5 = arith.subi %4, %3 : i32
    %c8_i32 = arith.constant 8 : i32
    %6 = arith.muli %3, %c8_i32 : i32
    %7 = tpu.assume_multiple %6, 8 : i32
    %c0 = arith.constant 0 : index
    %8 = arith.index_cast %7 : i32 to index
    %c0_2 = arith.constant 0 : index
    %9 = vector.load %arg3[%c0, %8, %c0_2] : memref<1x32x32xf32, #tpu.memory_space<vmem>>, vector<1x32x32xf32>
    %10 = vector.shape_cast %9 : vector<1x32x32xf32> to vector<32x32xf32>
    %c0_3 = arith.constant 0 : index
    %11 = arith.index_cast %7 : i32 to index
    %c0_4 = arith.constant 0 : index
    %12 = vector.load %arg4[%c0_3, %11, %c0_4] : memref<1x32x32xf32, #tpu.memory_space<vmem>>, vector<1x32x32xf32>
    %13 = vector.shape_cast %12 : vector<1x32x32xf32> to vector<32x32xf32>
    %c0_5 = arith.constant 0 : index
    %c0_6 = arith.constant 0 : index
    %c0_7 = arith.constant 0 : index
    %14 = vector.load %arg2[%c0_5, %c0_6, %c0_7] : memref<1x32x32xf32, #tpu.memory_space<vmem>>, vector<1x32x32xf32>
    %15 = vector.shape_cast %14 : vector<1x32x32xf32> to vector<32x32xf32>
    %cst = arith.constant 0.176776692 : f32
    %16 = vector.broadcast %cst : f32 to vector<32x32xf32>
    %17 = arith.mulf %15, %16 : vector<32x32xf32>
    %cst_8 = arith.constant dense<0.000000e+00> : vector<32x32xf32>
    %18 = tpu.matmul %17, %10, %cst_8 {dimension_numbers = #tpu.dot_dimension_numbers<[1], [1], [0], [0], [0, 0, 1, 0], [], []>} : vector<32x32xf32>, vector<32x32xf32>, vector<32x32xf32> -> vector<32x32xf32>
    %19 = tpu.iota {dimensions = array<i32: 0>} : vector<32x1xi32>
    %20 = tpu.iota {dimensions = array<i32: 1>} : vector<1x32xi32>
    %c3_i32 = arith.constant 3 : i32
    %21 = vector.broadcast %c3_i32 : i32 to vector<32x1xi32>
    %22 = arith.shrsi %19, %21 : vector<32x1xi32>
    %23 = vector.broadcast %5 : i32 to vector<32x1xi32>
    %24 = arith.addi %22, %23 : vector<32x1xi32>
    %c3_i32_9 = arith.constant 3 : i32
    %25 = vector.broadcast %c3_i32_9 : i32 to vector<1x32xi32>
    %26 = arith.shrsi %20, %25 : vector<1x32xi32>
    %c1_i32_10 = arith.constant 1 : i32
    %27 = vector.broadcast %c1_i32_10 : i32 to vector<32x1xi32>
    %28 = arith.subi %24, %27 : vector<32x1xi32>
    %29 = vector.broadcast %26 : vector<1x32xi32> to vector<32x32xi32>
    %30 = vector.broadcast %28 : vector<32x1xi32> to vector<32x32xi32>
    %31 = arith.cmpi sge, %29, %30 : vector<32x32xi32>
    %c0_i32_11 = arith.constant 0 : i32
    %32 = vector.broadcast %c0_i32_11 : i32 to vector<32x1xi32>
    %33 = arith.addi %24, %32 : vector<32x1xi32>
    %34 = vector.broadcast %26 : vector<1x32xi32> to vector<32x32xi32>
    %35 = vector.broadcast %33 : vector<32x1xi32> to vector<32x32xi32>
    %36 = arith.cmpi sle, %34, %35 : vector<32x32xi32>
    %37 = arith.andi %31, %36 : vector<32x32xi1>
    %cst_12 = arith.constant -3.40282347E+38 : f32
    %38 = vector.broadcast %cst_12 : f32 to vector<32x32xf32>
    %39 = arith.select %37, %18, %38 : vector<32x32xi1>, vector<32x32xf32>
    %cst_13 = arith.constant dense<0xFF800000> : vector<32xf32>
    %40 = vector.multi_reduction <maximumf>, %39, %cst_13 [1] : vector<32x32xf32> to vector<32xf32>
    %41 = vector.shape_cast %40 : vector<32xf32> to vector<32x1xf32>
    %42 = vector.broadcast %41 : vector<32x1xf32> to vector<32x32xf32>
    %43 = arith.subf %39, %42 : vector<32x32xf32>
    %44 = math.exp %43 : vector<32x32xf32>
    %cst_14 = arith.constant dense<0.000000e+00> : vector<32xf32>
    %45 = vector.multi_reduction <add>, %44, %cst_14 [1] : vector<32x32xf32> to vector<32xf32>
    %46 = vector.shape_cast %45 : vector<32xf32> to vector<32x1xf32>
    %47 = tpu.reciprocal %46 {approx = true} : vector<32x1xf32> -> vector<32x1xf32>
    %48 = vector.broadcast %47 : vector<32x1xf32> to vector<32x32xf32>
    %49 = arith.mulf %44, %48 : vector<32x32xf32>
    %cst_15 = arith.constant dense<0.000000e+00> : vector<32x32xf32>
    %50 = tpu.matmul %49, %13, %cst_15 {dimension_numbers = #tpu.dot_dimension_numbers<[1], [0], [0], [1], [0, 0, 1, 1], [], []>} : vector<32x32xf32>, vector<32x32xf32>, vector<32x32xf32> -> vector<32x32xf32>
    %c0_16 = arith.constant 0 : index
    %c0_17 = arith.constant 0 : index
    %c0_18 = arith.constant 0 : index
    %51 = vector.load %arg5[%c0_16, %c0_17, %c0_18] : memref<1x32x32xf32, #tpu.memory_space<vmem>>, vector<1x32x32xf32>
    %52 = vector.shape_cast %51 : vector<1x32x32xf32> to vector<32x32xf32>
    %53 = vector.shape_cast %50 : vector<32x32xf32> to vector<1x32x32xf32>
    tpu.vector_store %arg5[%c0_16, %c0_17, %c0_18], %53 {strides = array<i32>} : memref<1x32x32xf32, #tpu.memory_space<vmem>>, vector<1x32x32xf32>,
    return
  }
  func.func @transform_0(%arg0: i32, %arg1: i32) -> (i32, i32, i32) {
    %c0_i32 = arith.constant 0 : i32
    %c0_i32_0 = arith.constant 0 : i32
    return %arg0, %arg1, %c0_i32 : i32, i32, i32
  }
  func.func @transform_1(%arg0: i32, %arg1: i32) -> (i32, i32, i32) {
    %c0_i32 = arith.constant 0 : i32
    %c0_i32_0 = arith.constant 0 : i32
    %c0_i32_1 = arith.constant 0 : i32
    return %arg0, %c0_i32, %c0_i32_0 : i32, i32, i32
  }
  func.func @transform_2(%arg0: i32, %arg1: i32) -> (i32, i32, i32) {
    %c0_i32 = arith.constant 0 : i32
    %c0_i32_0 = arith.constant 0 : i32
    %c0_i32_1 = arith.constant 0 : i32
    return %arg0, %c0_i32, %c0_i32_0 : i32, i32, i32
  }
  func.func @transform_3(%arg0: i32, %arg1: i32) -> (i32, i32, i32) {
    %c0_i32 = arith.constant 0 : i32
    %c0_i32_0 = arith.constant 0 : i32
    return %arg0, %arg1, %c0_i32 : i32, i32, i32
  }
}

</mosaic_0001>

<bundles_post_ra>
// kernel: tpu_custom_call.1
= control target key start
LH: loop header
LB: loop body
LE: loop exit
PB: predicated region body
PF: predicated region fallthrough
CT: control target
= control target key end

     0   :  { %8 = vsyncpa [#allocation3], 0  ;;  %s1394_s0 = inlined_call_operand.hbm [shape: f32[4,32,32], index: 0, kind: input, shape index: {}]   ;;  %s1395_s1 = inlined_call_operand.hbm [shape: f32[4,32,32], index: 1, kind: input, shape index: {}]   ;;  %s1396_s2 = inlined_call_operand.hbm [shape: f32[4,32,32], index: 2, kind: input, shape index: {}]   ;;  %s1397_s3 = inlined_call_operand.hbm [shape: f32[4,32,32], index: 3, kind: output, shape index: {}]  }
   0x1   :  { %10 = vsyncpa [#allocation3 + $0x1], 0 }
   0x2   :  { %11 = vsyncpa [#allocation6], 0 }
   0x3   :  { %12 = vsyncpa [#allocation4], 0 }
   0x4   :  { %14 = vsyncpa [#allocation4 + $0x1], 0  ;;  %s1106_s12 = smov 0   ;;  %s1108_s13 = smov 0  }
   0x5   :  { %s1110_s14 = smov 0   ;;  %s1112_s15 = smov 0  }
   0x6   :  { %s1114_s16 = smov 0   ;;  %s1116_s17 = smov 0  }
   0x7 LB: > { %s702_s18 = sadd.s32 4294967295, %s1076_s17   ;;  %s703_s19 = sadd.s32 4294967294, %s1076_s17   ;;  %s1076_s17 = sphi %s1116_s17, %s20_s17   ;;  %s1072_s16 = sphi %s1114_s16, %s1416_s16   ;;  %s1068_s15 = sphi %s1112_s15, %s1415_s15   ;;  %s1064_s14 = sphi %s1110_s14, %s1414_s14   ;;  %s1060_s13 = sphi %s1108_s13, %s1413_s13   ;;  %s1056_s12 = sphi %s1106_s12, %s1412_s12  }
   0x8   : > { %p54_p0 = scmp.ne.s32.totalorder %s1060_s13, %s1056_s12  ;;  %p55_p1 = scmp.eq.s32.totalorder %s702_s18, 0 }
   0x9   : > { %p1138_p2 = scmp.eq.s32.totalorder %s702_s18, 3  ;;  %p138_p3 = scmp.eq.s32.totalorder %s703_s19, 3 }
   0xa   : > { %p1142_p4 = por %p55_p1, %p54_p0  ;;  %p704_p5 = scmp.ge.s32.totalorder %s1076_s17, 1 }
   0xb   : > { %s1401_s20 = scalar_select %p1138_p2, 1, 0 }
   0xc   : > { %s1402_s21 = scalar_select %p1142_p4, 1, 0 }
   0xd   : > { %p1147_p6 = por %p138_p3, %p54_p0  ;;  %p145_p7 = scmp.lt.s32.totalorder %s1076_s17, 5 }
   0xe   : > { %s1152_s23 = sshll.u32 %s1068_s15, 9  ;;  %s1078_s28 = smov [#allocation5]  }
   0xf   : > { %s1403_s22 = scalar_select %p1147_p6, 1, 0 }
  0x10   : > { %p1154_p8 = pnand %p704_p5, %p145_p7  ;;  %s1162_s27 = scalar_lea.hbm %s1395_s1, %s1152_s23 }
  0x11   : > { %s160_s29 = sshll.u32 %s1078_s28, 4  ;;  %s1172_s5 = scalar_lea.hbm %s1396_s2, %s1152_s23  ;;  %s1166_s29 = int_to_ptr.vmem [resolvable:$true] %s160_s29 }
  0x12   : > { %s1404_s24 = scalar_select %p1154_p8, 1, 0 }
  0x13   : > { %p813_p9 = pneg %p1154_p8  ;;  %s1079_s7 = smov [#allocation7]  }
  0x14   : > { %s1180_s8 = sshll.u32 %s1079_s7, 4  ;;  %s900_s9 = scalar_lea.hbm %s1162_s27, 512  ;;  %s177_s8 = int_to_ptr.vmem [resolvable:$true] %s1180_s8 }
  0x15   : > { %p1176_p10 = pnand %p813_p9, %p1142_p4  ;;  %p901_p11 = scmp.ne.s32.totalorder %s1162_s27, %s900_s9 }
  0x16   : > { %s905_s15 = scalar_lea.hbm %s1395_s1, 2048  ;;  %p906_p1 = scmp.lt.u32.totalorder %s1162_s27, %s1395_s1 }
  0x17   : > { %p902_p12 = pneg %p1176_p10  ;;  %p907_p3 = scmp.lt.u32.totalorder %s905_s15, %s900_s9 }
  0x18   : > { %p909_p7 = scmp.lt.u32.totalorder %s900_s9, %s1162_s27 }
  0x19   : > { %p903_p13 = pnand %p902_p12, %p901_p11  ;;  %p908_p5 = por %p907_p3, %p906_p1 }
  0x1b   : > { %p904_p0 = pneg %p903_p13  ;;  %p910_p9 = por %p909_p7, %p908_p5 }
  0x1d   : > { %p911_p6 = pnand %p910_p9, %p904_p0 }
  0x1f   : > { %914 = shalt.err (!%p911_p6)
}
  0x20   : > { %s915_s25 = scalar_lea.vmem %s1166_s29, 512  ;;  %p923_p8 = scmp.lt.s32.totalorder %s1166_s29, %s1166_s29 }
  0x21   : > { %p916_p11 = scmp.ne.s32.totalorder %s1166_s29, %s915_s25  ;;  %p924_p2 = scmp.lt.s32.totalorder %s915_s25, %s915_s25 }
  0x23   : > { %p918_p13 = pnand %p916_p11, %p902_p12  ;;  %p925_p1 = por %p924_p2, %p923_p8 }
  0x25   : > { %p919_p4 = pneg %p918_p13 }
  0x27   : > { %p926_p3 = pnand %p925_p1, %p919_p4 }
  0x29   : > { %929 = shalt.err (!%p926_p3)
}
  0x2a   : > { %s1080_s26 = smov 128   ;;  %s1081_s28 = smov 8  }
  0x2b   : > { %816 = dma.hbm_to_vmem [thread:$0]  (!%p1176_p10), %s1162_s27, 512, %s1166_s29, [#allocation6], %s1080_s26, %s1080_s26, %s1081_s28  }
  0x2c   : > { %s930_s30 = scalar_lea.hbm %s1172_s5, 512  ;;  %s935_s9 = scalar_lea.hbm %s1396_s2, 2048 }
  0x2d   : > { %p931_p2 = scmp.ne.s32.totalorder %s1172_s5, %s930_s30  ;;  %p936_p8 = scmp.lt.u32.totalorder %s1172_s5, %s1396_s2 }
  0x2e   : > { %p937_p0 = scmp.lt.u32.totalorder %s935_s9, %s930_s30  ;;  %p939_p7 = scmp.lt.u32.totalorder %s930_s30, %s1172_s5 }
  0x2f   : > { %p933_p4 = pnand %p931_p2, %p902_p12 }
  0x30   : > { %p938_p5 = por %p937_p0, %p936_p8 }
  0x31   : > { %p934_p6 = pneg %p933_p4 }
  0x32   : > { %p940_p9 = por %p939_p7, %p938_p5 }
  0x34   : > { %p941_p11 = pnand %p940_p9, %p934_p6 }
  0x36   : > { %944 = shalt.err (!%p941_p11)
}
  0x37   : > { %s945_s27 = scalar_lea.vmem %s177_s8, 512  ;;  %p953_p2 = scmp.lt.s32.totalorder %s177_s8, %s177_s8 }
  0x38   : > { %p946_p13 = scmp.ne.s32.totalorder %s177_s8, %s945_s27  ;;  %p954_p4 = scmp.lt.s32.totalorder %s945_s27, %s945_s27 }
  0x3a   : > { %p948_p1 = pnand %p946_p13, %p902_p12  ;;  %p955_p0 = por %p954_p4, %p953_p2 }
  0x3c   : > { %p949_p3 = pneg %p948_p1 }
  0x3e   : > { %p956_p8 = pnand %p955_p0, %p949_p3 }
  0x40   : > { %959 = shalt.err (!%p956_p8)
}
  0x41   : > { %819 = dma.hbm_to_vmem [thread:$0]  (!%p1176_p10), %s1172_s5, 512, %s177_s8, [#allocation6], %s1080_s26, %s1080_s26, %s1081_s28  }
  0x42   : > { %s32_s29 = sadd.s32 1, %s1072_s16  ;;  %s41_s15 = sadd.s32 1, %s1064_s14 }
  0x43   : > { %p34_p12 = scmp.ge.s32.totalorder %s32_s29, 4  ;;  %p48_p6 = scmp.ne.s32.totalorder %s1064_s14, %s1060_s13 }
  0x44   : > { %p49_p5 = scmp.eq.s32.totalorder %s1076_s17, 0  ;;  %p828_p7 = scmp.lt.s32.totalorder %s1076_s17, 4 }
  0x45   : > { %s1418_s29 = smov (%p34_p12, %s32_s29), 0  ;;  %p1406_p11 = scmp.ne.s32.totalorder %s1401_s20, 0 }
  0x46   : > { %p50_p9 = por %p49_p5, %p48_p6  ;;  %s36_s18 = ssub.s32 %s1072_s16, %s1418_s29 }
  0x47   : > { %p1244_p13 = por %p1406_p11, %p48_p6  ;;  %s190_s19 = sand.u32 1, %s1064_s14  }
  0x48   : > { %p39_p1 = scmp.eq.s32.totalorder %s36_s18, 0  ;;  %s710_s5 = sshll.u32 %s190_s19, 5 }
  0x49   : > { %s739_s8 = sshll.u32 %s1072_s16, 9  ;;  %s194_s20 = scalar_lea.vmem [#allocation2], %s710_s5 }
  0x4a   : > { %s1253_s25 = scalar_select %p39_p1, %s1064_s14, %s41_s15  }
  0x4b   : > { %s1258_s7 = scalar_lea.hbm %s1394_s0, %s739_s8  ;;  %s203_s9 = sshll.u32 %s194_s20, 4  ;;  %s1266_s9 = int_to_ptr.vmem [resolvable:$true] %s203_s9 }
  0x4c   : > { %p1262_p10 = pnand %p828_p7, %p50_p9  ;;  %s1268_s11 = scalar_lea.sflag [#allocation3], %s190_s19 }
  0x4d   : > { %s960_s27 = scalar_lea.hbm %s1258_s7, 512  ;;  %s965_s5 = scalar_lea.hbm %s1394_s0, 2048 }
  0x4e   : > { %p961_p3 = scmp.ne.s32.totalorder %s1258_s7, %s960_s27  ;;  %p962_p2 = pneg %p1262_p10 }
  0x4f   : > { %p966_p8 = scmp.lt.u32.totalorder %s1258_s7, %s1394_s0  ;;  %p967_p12 = scmp.lt.u32.totalorder %s965_s5, %s960_s27 }
  0x50   : > { %p963_p4 = pnand %p962_p2, %p961_p3  ;;  %p969_p5 = scmp.lt.u32.totalorder %s960_s27, %s1258_s7 }
  0x51   : > { %p968_p6 = por %p967_p12, %p966_p8 }
  0x52   : > { %p964_p0 = pneg %p963_p4 }
  0x53   : > { %p970_p7 = por %p969_p5, %p968_p6 }
  0x55   : > { %p971_p9 = pnand %p970_p7, %p964_p0 }
  0x57   : > { %974 = shalt.err (!%p971_p9)
}
  0x58   : > { %s975_s19 = scalar_lea.vmem %s1266_s9, 512  ;;  %s1082_s4 = smov [#allocation2]  }
  0x59   : > { %p976_p11 = scmp.ne.s32.totalorder %s1266_s9, %s975_s19  ;;  %s980_s20 = sshll.u32 %s1082_s4, 4  ;;  %s981_s20 = int_to_ptr.vmem [resolvable:$false] %s980_s20 }
  0x5a   : > { %s982_s15 = scalar_lea.vmem %s981_s20, 1024  ;;  %p983_p4 = scmp.lt.s32.totalorder %s1266_s9, %s981_s20 }
  0x5b   : > { %p978_p1 = pnand %p976_p11, %p962_p2  ;;  %p984_p8 = scmp.lt.s32.totalorder %s982_s15, %s975_s19 }
  0x5d   : > { %p979_p3 = pneg %p978_p1  ;;  %p985_p12 = por %p984_p8, %p983_p4 }
  0x5f   : > { %p986_p6 = pnand %p985_p12, %p979_p3 }
  0x61   : > { %989 = shalt.err (!%p986_p6)
}
  0x62   : > { %823 = dma.hbm_to_vmem [thread:$0]  (!%p1262_p10), %s1258_s7, 512, %s1266_s9, %s1268_s11, %s1080_s26, %s1080_s26, %s1081_s28  }
  0x63   : > { %p1409_p2 = scmp.ne.s32.totalorder %s1404_s24, 0 }
  0x64   : > { %s1302_s27 = sand.u32 (!%p1409_p2), 1, %s1060_s13   ;;  %p1410_p0 = scmp.ne.s32.totalorder (!%p1409_p2), %s1402_s21, 0 }
  0x65   : > { %215 = sbr.rel (%p1409_p2) target bundleno = 894 (0x37e), region = 32  ;;  %s714_s18 = sshll.u32 (!%p1409_p2), %s1302_s27, 5 }
  0x66   : > { %s218_s5 = scalar_lea.sflag (!%p1409_p2), [#allocation3], %s1302_s27  ;;  %s221_s10 = scalar_lea.vmem (!%p1409_p2), [#allocation2], %s714_s18 }
  0x6c   : > { %1043 = dma.done.wait (%p1410_p0), %s218_s5, 512  }
  0x6d   : > { %1045 = vsyncadd (%p1410_p0), %s218_s5, 4294966784 }
  0x6e   : > { %1047 = dma.done.wait (%p1410_p0), [#allocation6], 1024  }
  0x6f   : > { %1049 = vsyncadd (%p1410_p0), [#allocation6], 4294966272  ;;  %vm280_vm0 = vcmask 261120   ;;  %v263_v0 = vld [vmem:[#allocation5] sm:$0xff]  ;;  %v264_v1 = vld [vmem:[#allocation5 + $0x8] sm:$0xff]  ;;  %v390_v14 = vlaneseq  ;;  %s251_s21 = scalar_lea.vmem [#allocation8], %s714_s18  ;;  %s1344_s7 = scalar_lea.hbm %s1397_s3, %s1152_s23 }
  0x70   : > { %vm786_vm1 = vmpackc.low %vm280_vm0, %vm280_vm0  ;;  %v265_v2 = vld [vmem:[#allocation5 + $0x10] sm:$0xff]  ;;  %v785_v3 = vpack.c.bf16 %v264_v1, %v263_v0  ;;  %v266_v4 = vld [vmem:[#allocation5 + $0x18] sm:$0xff]  ;;  %s588_s24 = sshll.u32 %s251_s21, 4  ;;  %s573_s9 = scalar_lea.sflag [#allocation4], %s1302_s27  ;;  %s1337_s24 = int_to_ptr.vmem [resolvable:$true] %s588_s24 }
  0x71   : > { %v272_v5 = vld [vmem:[%s221_s10] sm:$0xff]  ;;  %v791_v6 = vpack.c.bf16 %v266_v4, %v265_v2  ;;  %v273_v8 = vld [vmem:[%s221_s10 + $0x8] sm:$0xff]  ;;  %v274_v9 = vld [vmem:[%s221_s10 + $0x10] sm:$0xff]  ;;  %v391_v15 = vshrl.u32 %v390_v14, 7  ;;  %v396_v17 = vand.u32 127, %v390_v14  ;;  %s990_s11 = scalar_lea.vmem %s1337_s24, 512 }
  0x72   : > { %v276_v7 = vmul.f32 0.17677669, %v272_v5  ;;  %787 = vmatprep.subr.msk.bf16.mxu0 %vm786_vm1, %v785_v3  ;;  %v277_v10 = vmul.f32 0.17677669, %v273_v8  ;;  %v278_v11 = vmul.f32 0.17677669, %v274_v9  ;;  %p991_p10 = scmp.ne.s32.totalorder %s1337_s24, %s990_s11 }
  0x73   : > { %790 = vmatpush3.bf16.xpose.msk.msra.mxu0 %vm786_vm1, %v785_v3  ;;  %v275_v12 = vld [vmem:[%s221_s10 + $0x18] sm:$0xff]  ;;  %v392_v16 = vadd.s32 8, %v391_v15  ;;  %v397_v18 = vshra.s32 %v391_v15, 3  ;;  %v393_v19 = vadd.s32 16, %v391_v15  ;;  %v394_v21 = vadd.s32 24, %v391_v15  ;;  %v268_v61 = vld [vmem:[#allocation7] sm:$0xff] }
  0x74   : > { %765 = vmatprep.mubr.msk.f32.mxu0 %vm280_vm0, %v276_v7  ;;  %793 = vmatprep.subr.msk.bf16.mxu0 %vm786_vm1, %v791_v6  ;;  %v279_v13 = vmul.f32 0.17677669, %v275_v12  ;;  %v406_v22 = vshra.s32 %v396_v17, 3  ;;  %v269_v62 = vld [vmem:[#allocation7 + $0x8] sm:$0xff]  ;;  %v270_v0 = vld [vmem:[#allocation7 + $0x10] sm:$0xff]  ;;  %v271_v1 = vld [vmem:[#allocation7 + $0x18] sm:$0xff]  ;;  %p992_p5 = pnand %p991_p10, %p1244_p13 }
  0x75   : > { %v398_v20 = vshra.s32 %v392_v16, 3  ;;  %v724_v23 = vadd.s32 4294967295, %v397_v18  ;;  %v399_v24 = vshra.s32 %v393_v19, 3  ;;  %v400_v26 = vshra.s32 %v394_v21, 3  ;;  %s1083_s8 = smov [#allocation8]  }
  0x76   : > { %vm415_vm3 = vcmp.le.s32.totalorder %v406_v22, %v397_v18  ;;  %v797_v63 = vpack.c.bf16 %v269_v62, %v268_v61  ;;  %v801_v2 = vpack.c.bf16 %v271_v1, %v270_v0  ;;  %p993_p7 = pneg %p992_p5  ;;  %s994_s30 = sshll.u32 %s1083_s8, 4  ;;  %s995_s30 = int_to_ptr.vmem [resolvable:$false] %s994_s30 }
  0x77   : > { %v725_v25 = vadd.s32 4294967295, %v398_v20  ;;  %vm411_vm2 = vcmp.ge.s32.totalorder %v406_v22, %v724_v23  ;;  %v726_v27 = vadd.s32 4294967295, %v399_v24  ;;  %vm416_vm5 = vcmp.le.s32.totalorder %v406_v22, %v398_v20  ;;  %s996_s19 = scalar_lea.vmem %s995_s30, 1024  ;;  %p997_p9 = scmp.lt.s32.totalorder %s1337_s24, %s995_s30 }
  0x78   : > { %v727_v28 = vadd.s32 4294967295, %v400_v26  ;;  %vm419_vm6 = vmand %vm411_vm2, %vm415_vm3  ;;  %vm417_vm8 = vcmp.le.s32.totalorder %v406_v22, %v399_v24  ;;  %vm418_vm11 = vcmp.le.s32.totalorder %v406_v22, %v400_v26  ;;  %798 = vmatprep.subr.bf16.mxu1 %v797_v63  ;;  %p998_p11 = scmp.lt.s32.totalorder %s996_s19, %s990_s11 }
  0x79   : > { %vm412_vm4 = vcmp.ge.s32.totalorder %v406_v22, %v725_v25  ;;  %vm413_vm7 = vcmp.ge.s32.totalorder %v406_v22, %v726_v27  ;;  %800 = vmatpush3.bf16.msra.mxu1 %v797_v63 }
  0x7a   : > { %vm420_vm9 = vmand %vm412_vm4, %vm416_vm5  ;;  %vm414_vm10 = vcmp.ge.s32.totalorder %v406_v22, %v727_v28  ;;  %802 = vmatprep.subr.bf16.mxu1 %v801_v2  ;;  %p999_p1 = por %p998_p11, %p997_p9 }
  0x7b   : > { %796 = vmatpush3.bf16.xpose.msk.msra.mxu0 %vm786_vm1, %v791_v6  ;;  %vm421_vm12 = vmand %vm413_vm7, %vm417_vm8 }
  0x7c   : > { %vm422_vm13 = vmand %vm414_vm10, %vm418_vm11  ;;  %p1000_p3 = pnand %p999_p1, %p993_p7 }
  0x7d   : > { %804 = vmatpush3.bf16.msra.mxu1 %v801_v2 }
  0x82   : > { %766 = vmatmul.mubr.msk.f32.vlgmr.msra.gmra.mrb[0].mxu0 %vm280_vm0, %v277_v10 }
  0x83   : > { %768 = vmatprep.mubr.msk.f32.mxu0 %vm280_vm0, %v278_v11 }
  0x86   : > { %769 = vmatmul.mubr.msk.f32.gmra.mrb[2].mxu0 %vm280_vm0, %v279_v13 }
 0x155   : > { %v767_v29 = vpop.f32.mrb[0].mxu0 }
 0x156   : > { %v371_v30 = vpop.f32.mrb[1].mxu0  ;;  %v424_v33 = vsel %vm420_vm9, %v767_v29, -3.4028235e+38 }
 0x157   : > { %v423_v31 = vsel %vm419_vm6, %v371_v30, -3.4028235e+38  ;;  %v430_v37 = vsel %vm280_vm0, %v424_v33, -inf }
 0x158   : > { %v427_v32 = vsel %vm280_vm0, %v423_v31, -inf }
 0x159   : > { %428 = vmax.xlane.f32.xlu0 %v427_v32  ;;  %v770_v34 = vpop.f32.mrb[2].mxu0 }
 0x15a   : > { %v381_v35 = vpop.f32.mrb[3].mxu0  ;;  %v426_v39 = vsel %vm422_vm13, %v770_v34, -3.4028235e+38 }
 0x15b   : > { %v425_v36 = vsel %vm421_vm12, %v381_v35, -3.4028235e+38  ;;  %v436_v40 = vsel %vm280_vm0, %v426_v39, -inf }
 0x15c   : > { %v433_v38 = vsel %vm280_vm0, %v425_v36, -inf }
 0x15d   : > { %431 = vmax.xlane.f32.xlu0 %v430_v37  ;;  %434 = vmax.xlane.f32.xlu1 %v433_v38 }
 0x161   : > { %437 = vmax.xlane.f32.xlu1 %v436_v40 }
 0x1e6   : > { %v429_v41 = vpop.xlane.xlu0 %428 }
 0x1e7   : > { %v439_v42 = vsub.f32 %v423_v31, %v429_v41 }
 0x1e9   : > { %v443_v43 = vmul.f32 1.442695, %v439_v42 }
 0x1ea   : > { %v432_v44 = vpop.xlane.xlu0 %431  ;;  %v435_v45 = vpop.xlane.xlu1 %434 }
 0x1eb   : > { %884 = vpow2.f32 %v443_v43  ;;  %v440_v46 = vsub.f32 %v424_v33, %v432_v44  ;;  %v441_v47 = vsub.f32 %v425_v36, %v435_v45 }
 0x1ed   : > { %v445_v48 = vmul.f32 1.442695, %v440_v46  ;;  %v447_v49 = vmul.f32 1.442695, %v441_v47 }
 0x1ee   : > { %v438_v50 = vpop.xlane.xlu1 %437 }
 0x1ef   : > { %886 = vpow2.f32 %v445_v48  ;;  %v442_v51 = vsub.f32 %v426_v39, %v438_v50 }
 0x1f0   : > { %888 = vpow2.f32 %v447_v49 }
 0x1f1   : > { %v449_v52 = vmul.f32 1.442695, %v442_v51 }
 0x1f3   : > { %890 = vpow2.f32 %v449_v52 }
 0x1f5   : > { %v885_v53 = vpop.eup %884 }
 0x1f6   : > { %v451_v54 = vsel %vm280_vm0, %v885_v53, 0.0 }
 0x1f7   : > { %452 = vadd.xlane.f32.xlu0 %v451_v54 }
 0x1f9   : > { %v887_v55 = vpop.eup %886 }
 0x1fa   : > { %v889_v56 = vpop.eup %888  ;;  %v454_v57 = vsel %vm280_vm0, %v887_v55, 0.0 }
 0x1fb   : > { %455 = vadd.xlane.f32.xlu1 %v454_v57  ;;  %v457_v58 = vsel %vm280_vm0, %v889_v56, 0.0 }
 0x1fc   : > { %458 = vadd.xlane.f32.xlu0 %v457_v58 }
 0x1fd   : > { %v891_v59 = vpop.eup %890 }
 0x1fe   : > { %v460_v60 = vsel %vm280_vm0, %v891_v59, 0.0 }
 0x1ff   : > { %461 = vadd.xlane.f32.xlu1 %v460_v60 }
 0x284   : > { %v453_v3 = vpop.xlane.xlu0 %452 }
 0x285   : > { %892 = vrcp.f32 %v453_v3 }
 0x288   : > { %v456_v4 = vpop.xlane.xlu1 %455 }
 0x289   : > { %v459_v5 = vpop.xlane.xlu0 %458  ;;  %894 = vrcp.f32 %v456_v4 }
 0x28a   : > { %896 = vrcp.f32 %v459_v5 }
 0x28c   : > { %v462_v6 = vpop.xlane.xlu1 %461 }
 0x28d   : > { %898 = vrcp.f32 %v462_v6 }
 0x28f   : > { %v893_v7 = vpop.eup %892 }
 0x290   : > { %v467_v8 = vmul.f32 %v893_v7, %v885_v53 }
 0x292   : > { %779 = vmatprep.mubr.msk.f32.mxu1 %vm280_vm0, %v467_v8 }
 0x293   : > { %v895_v9 = vpop.eup %894 }
 0x294   : > { %v897_v10 = vpop.eup %896  ;;  %v468_v11 = vmul.f32 %v895_v9, %v887_v55 }
 0x295   : > { %v469_v12 = vmul.f32 %v897_v10, %v889_v56 }
 0x296   : > { %780 = vmatmul.mubr.msk.f32.vlgmr.msra.gmra.mrb[0].mxu1 %vm280_vm0, %v468_v11 }
 0x297   : > { %v899_v13 = vpop.eup %898  ;;  %782 = vmatprep.mubr.msk.f32.mxu1 %vm280_vm0, %v469_v12 }
 0x298   : > { %v470_v14 = vmul.f32 %v899_v13, %v891_v59 }
 0x29a   : > { %783 = vmatmul.mubr.msk.f32.gmra.mrb[2].mxu1 %vm280_vm0, %v470_v14 }
 0x369   : > { %v781_v15 = vpop.f32.mrb[0].mxu1 }
 0x36a   : > { %569 = vst.msk [vmem:[%s251_s21 + $0x8] sm:$0xff] %vm280_vm0, %v781_v15  ;;  %v549_v16 = vpop.f32.mrb[1].mxu1 }
 0x36b   : > { %568 = vst.msk [vmem:[%s251_s21] sm:$0xff] %vm280_vm0, %v549_v16 }
 0x36d   : > { %v784_v17 = vpop.f32.mrb[2].mxu1 }
 0x36e   : > { %571 = vst.msk [vmem:[%s251_s21 + $0x18] sm:$0xff] %vm280_vm0, %v784_v17  ;;  %v559_v18 = vpop.f32.mrb[3].mxu1 }
 0x36f   : > { %570 = vst.msk [vmem:[%s251_s21 + $0x10] sm:$0xff] %vm280_vm0, %v559_v18 }
 0x370   : > { %1003 = shalt.err (!%p1000_p3)
}
 0x371   : > { %s1004_s23 = scalar_lea.hbm %s1344_s7, 512  ;;  %s1008_s15 = scalar_lea.hbm %s1397_s3, 2048 }
 0x372   : > { %p1005_p4 = scmp.ne.s32.totalorder %s1344_s7, %s1004_s23  ;;  %p1009_p6 = scmp.lt.u32.totalorder %s1344_s7, %s1397_s3 }
 0x373   : > { %p1010_p2 = scmp.lt.u32.totalorder %s1008_s15, %s1004_s23  ;;  %p1012_p10 = scmp.lt.u32.totalorder %s1004_s23, %s1344_s7 }
 0x374   : > { %p1006_p8 = pnand %p1005_p4, %p1244_p13 }
 0x375   : > { %p1011_p0 = por %p1010_p2, %p1009_p6 }
 0x376   : > { %p1007_p12 = pneg %p1006_p8 }
 0x377   : > { %p1013_p5 = por %p1012_p10, %p1011_p0 }
 0x379   : > { %p1014_p7 = pnand %p1013_p5, %p1007_p12 }
 0x37b   : > { %1017 = shalt.err (!%p1014_p7)
}
 0x37c   : > { %s1084_s10 = smov 128   ;;  %s1085_s21 = smov 8  }
 0x37d   : > { %811 = dma.vmem_to_hbm [thread:$0]  (%p1244_p13), %s1337_s24, 512, %s1344_s7, %s573_s9, %s1084_s10, %s1084_s10, %s1085_s21  }
 0x37e PF: > { %p829_p9 = scmp.ge.s32.totalorder %s1076_s17, 2  ;;  %s603_s26 = sand.u32 1, %s1056_s12  }
 0x37f   : > { %p1411_p11 = scmp.ne.s32.totalorder %s1403_s22, 0  ;;  %s604_s28 = scalar_lea.sflag [#allocation4], %s603_s26 }
 0x381   : > { %p825_p1 = pnand %p829_p9, %p1411_p11 }
 0x383   : > { %1051 = dma.done.wait (!%p825_p1), %s604_s28, 512  }
 0x384   : > { %1053 = vsyncadd (!%p825_p1), %s604_s28, 4294966784  ;;  %s20_s17 = sadd.s32 1, %s1076_s17   ;;  %s1412_s12 = smov %s1060_s13 }
 0x385   : > { %p17_p3 = scmp.ge.s32.totalorder %s20_s17, 6   ;;  %s1413_s13 = smov %s1064_s14 }
 0x386   : > { %s1414_s14 = smov %s1253_s25  ;;  %s1415_s15 = smov %s1072_s16 }
 0x387   : > { %s1416_s16 = smov %s1418_s29  ;;  %19 = sbr.rel (!%p17_p3) target bundleno = 7 (0x7), region = 89 }
 0x38e   :  { %609 = vsyncpa [#allocation3], 1 }
 0x38f   :  { %611 = vsyncpa [#allocation3 + $0x1], 1 }
 0x390   :  { %612 = vsyncpa [#allocation6], 1 }
 0x391   :  { %613 = vsyncpa [#allocation4], 1 }
 0x392   :  { %615 = vsyncpa [#allocation4 + $0x1], 1 }

// kernel: tpu_custom_call.1
= control target key start
LH: loop header
LB: loop body
LE: loop exit
PB: predicated region body
PF: predicated region fallthrough
CT: control target
= control target key end

     0   :  { %s1463_s0 = inlined_call_operand.hbm [shape: f32[4,32,32], index: 0, kind: input, shape index: {}]   ;;  %s1464_s1 = inlined_call_operand.hbm [shape: f32[4,32,32], index: 1, kind: input, shape index: {}]   ;;  %s1465_s2 = inlined_call_operand.hbm [shape: f32[4,32,32], index: 2, kind: input, shape index: {}]   ;;  %s1466_s3 = inlined_call_operand.hbm [shape: f32[4,32,32], index: 3, kind: output, shape index: {}]  }
   0x1   :  { %1476 = sst [smem:[#allocation15_spill]] %s1464_s1 }
   0x2   :  { %8 = vsyncpa [#allocation3], 0 }
   0x3   :  { %10 = vsyncpa [#allocation3 + $0x1], 0 }
   0x4   :  { %11 = vsyncpa [#allocation6], 0 }
   0x5   :  { %13 = vsyncpa [#allocation6 + $0x1], 0 }
   0x6   :  { %14 = vsyncpa [#allocation4], 0 }
   0x7   :  { %16 = vsyncpa [#allocation4 + $0x1], 0  ;;  %s1159_s12 = smov 0   ;;  %s1161_s13 = smov 0  }
   0x8   :  { %s1163_s14 = smov 0   ;;  %s1165_s15 = smov 0  }
   0x9   :  { %s1167_s16 = smov 0   ;;  %s1169_s17 = smov 0  }
   0xa LB: > { %1477 = sst [smem:[#allocation12_spill]] %s1125_s16  ;;  %s1190_s18 = sadd.s32 4294967295, %s1129_s17   ;;  %s1129_s17 = sphi %s1169_s17, %s22_s17   ;;  %s1125_s16 = sphi %s1167_s16, %s1499_s16   ;;  %s1121_s15 = sphi %s1165_s15, %s1498_s15   ;;  %s1117_s14 = sphi %s1163_s14, %s1502_s14   ;;  %s1113_s13 = sphi %s1161_s13, %s1501_s13   ;;  %s1109_s12 = sphi %s1159_s12, %s1500_s12  }
   0xb   : > { %s755_s19 = sadd.s32 4294967294, %s1129_s17   ;;  %s34_s20 = sadd.s32 1, %s1125_s16 }
   0xc   : > { %s43_s21 = sadd.s32 1, %s1117_s14  ;;  %p36_p0 = scmp.ge.s32.totalorder %s34_s20, 4 }
   0xd   : > { %p50_p1 = scmp.ne.s32.totalorder %s1117_s14, %s1113_s13  ;;  %p51_p2 = scmp.eq.s32.totalorder %s1129_s17, 0 }
   0xe   : > { %p56_p3 = scmp.ne.s32.totalorder %s1113_s13, %s1109_s12  ;;  %s1504_s20 = smov (%p36_p0, %s34_s20), 0 }
   0xf   : > { %1478 = sst [smem:[#allocation13_spill]] %s1504_s20  ;;  %p1202_p4 = por %p51_p2, %p50_p1 }
  0x10   : > { %p57_p5 = scmp.eq.s32.totalorder %s1190_s18, 0  ;;  %s38_s23 = ssub.s32 %s1125_s16, %s1504_s20 }
  0x11   : > { %p134_p6 = scmp.eq.s32.totalorder %s1190_s18, 3  ;;  %p41_p7 = scmp.eq.s32.totalorder %s38_s23, 0 }
  0x12   : > { %p1210_p8 = por %p57_p5, %p56_p3  ;;  %p140_p10 = scmp.eq.s32.totalorder %s755_s19, 3 }
  0x13   : > { %p1214_p9 = por %p134_p6, %p50_p1  ;;  %p883_p12 = scmp.lt.s32.totalorder %s1129_s17, 4 }
  0x14   : > { %s1480_s24 = scalar_select %p1210_p8, 1, 0 }
  0x15   : > { %s1481_s25 = scalar_select %p1214_p9, 1, 0 }
  0x16   : > { %s1219_s26 = scalar_select %p41_p7, %s1117_s14, %s43_s21  }
  0x17   : > { %p1221_p11 = por %p140_p10, %p56_p3  ;;  %s1469_s28 = sand.u32 1, %s1117_s14  }
  0x18   : > { %1482 = sst [smem:[#allocation14_spill]] %s1219_s26  ;;  %s1229_s29 = sshll.u32 %s1469_s28, 5 }
  0x19   : > { %s1483_s27 = scalar_select %p1221_p11, 1, 0 }
  0x1a   : > { %s1232_s30 = sshll.u32 %s1125_s16, 9  ;;  %p1236_p13 = pnand %p883_p12, %p1202_p4 }
  0x1b   : > { %s183_s5 = sand.u32 1, %s1129_s17   ;;  %s1485_s1 = sld [smem:[#allocation15_spill]] }
  0x1c   : > { %s187_s9 = scalar_lea.vmem [#allocation5], %s1229_s29  ;;  %s1252_s11 = scalar_lea.sflag [#allocation6], %s183_s5 }
  0x1d   : > { %s194_s10 = sshll.u32 %s187_s9, 4  ;;  %p1258_p3 = pneg %p1236_p13  ;;  %s1249_s10 = int_to_ptr.vmem [resolvable:$true] %s194_s10 }
  0x21   : > { %s1245_s8 = scalar_lea.hbm %s1485_s1, %s1232_s30  ;;  %s958_s6 = scalar_lea.hbm %s1485_s1, 2048 }
  0x22   : > { %s953_s19 = scalar_lea.hbm %s1245_s8, 512  ;;  %p959_p6 = scmp.lt.u32.totalorder %s1245_s8, %s1485_s1 }
  0x23   : > { %p954_p2 = scmp.ne.s32.totalorder %s1245_s8, %s953_s19  ;;  %p960_p7 = scmp.lt.u32.totalorder %s958_s6, %s953_s19 }
  0x24   : > { %p962_p12 = scmp.lt.u32.totalorder %s953_s19, %s1245_s8 }
  0x25   : > { %p956_p4 = pnand %p1258_p3, %p954_p2  ;;  %p961_p10 = por %p960_p7, %p959_p6 }
  0x27   : > { %p957_p5 = pneg %p956_p4  ;;  %p963_p0 = por %p962_p12, %p961_p10 }
  0x29   : > { %p964_p1 = pnand %p963_p0, %p957_p5 }
  0x2b   : > { %967 = shalt.err (!%p964_p1)
}
  0x2c   : > { %s968_s5 = scalar_lea.vmem %s1249_s10, 512  ;;  %s1131_s22 = smov [#allocation5]  }
  0x2d   : > { %p969_p2 = scmp.ne.s32.totalorder %s1249_s10, %s968_s5  ;;  %s973_s23 = sshll.u32 %s1131_s22, 4  ;;  %s974_s23 = int_to_ptr.vmem [resolvable:$false] %s973_s23 }
  0x2e   : > { %s975_s7 = scalar_lea.vmem %s974_s23, 1024  ;;  %p976_p9 = scmp.lt.s32.totalorder %s1249_s10, %s974_s23 }
  0x2f   : > { %p971_p4 = pnand %p969_p2, %p1258_p3  ;;  %p977_p8 = scmp.lt.s32.totalorder %s975_s7, %s968_s5 }
  0x31   : > { %p972_p11 = pneg %p971_p4  ;;  %p978_p6 = por %p977_p8, %p976_p9 }
  0x33   : > { %p979_p7 = pnand %p978_p6, %p972_p11 }
  0x35   : > { %982 = shalt.err (!%p979_p7)
}
  0x36   : > { %s1470_s19 = smov 128   ;;  %s1472_s6 = smov 8  }
  0x37   : > { %875 = dma.hbm_to_vmem [thread:$0]  (!%p1236_p13), %s1245_s8, 512, %s1249_s10, %s1252_s11, %s1470_s19, %s1470_s19, %s1472_s6  }
  0x38   : > { %p1487_p8 = scmp.lt.s32.totalorder %s1129_s17, 5  ;;  %p1488_p9 = scmp.ge.s32.totalorder %s1129_s17, 1 }
  0x39   : > { %s1297_s23 = scalar_lea.hbm %s1463_s0, %s1232_s30  ;;  %s164_s7 = scalar_lea.vmem [#allocation2], %s1229_s29 }
  0x3a   : > { %p1289_p11 = pnand %p1488_p9, %p1487_p8  ;;  %s173_s28 = sshll.u32 %s164_s7, 4  ;;  %s1300_s28 = int_to_ptr.vmem [resolvable:$true] %s173_s28 }
  0x3b   : > { %s1306_s19 = scalar_lea.hbm %s1465_s2, %s1232_s30  ;;  %s1490_s6 = sand.u32 1, %s1117_s14  }
  0x3c   : > { %s1489_s9 = scalar_select %p1289_p11, 1, 0 }
  0x3d   : > { %s1310_s1 = scalar_lea.sflag [#allocation3], %s1490_s6  ;;  %s983_s20 = scalar_lea.hbm %s1297_s23, 512 }
  0x3e   : > { %p984_p0 = scmp.ne.s32.totalorder %s1297_s23, %s983_s20  ;;  %s988_s16 = scalar_lea.hbm %s1463_s0, 2048 }
  0x3f   : > { %p989_p10 = scmp.lt.u32.totalorder %s1297_s23, %s1463_s0  ;;  %p990_p12 = scmp.lt.u32.totalorder %s988_s16, %s983_s20 }
  0x40   : > { %p986_p1 = pnand %p984_p0, %p1258_p3  ;;  %p992_p4 = scmp.lt.u32.totalorder %s983_s20, %s1297_s23 }
  0x41   : > { %p991_p2 = por %p990_p12, %p989_p10 }
  0x42   : > { %p987_p5 = pneg %p986_p1 }
  0x43   : > { %p993_p6 = por %p992_p4, %p991_p2 }
  0x45   : > { %p994_p7 = pnand %p993_p6, %p987_p5 }
  0x47   : > { %997 = shalt.err (!%p994_p7)
}
  0x48   : > { %s998_s30 = scalar_lea.vmem %s1300_s28, 512  ;;  %s1134_s6 = smov [#allocation2]  }
  0x49   : > { %p999_p8 = scmp.ne.s32.totalorder %s1300_s28, %s998_s30  ;;  %s1003_s8 = sshll.u32 %s1134_s6, 4  ;;  %s1004_s8 = int_to_ptr.vmem [resolvable:$false] %s1003_s8 }
  0x4a   : > { %s1005_s26 = scalar_lea.vmem %s1004_s8, 1024  ;;  %p1006_p1 = scmp.lt.s32.totalorder %s1300_s28, %s1004_s8 }
  0x4b   : > { %p1001_p9 = pnand %p999_p8, %p1258_p3  ;;  %p1007_p11 = scmp.lt.s32.totalorder %s1005_s26, %s998_s30 }
  0x4d   : > { %p1002_p0 = pneg %p1001_p9  ;;  %p1008_p10 = por %p1007_p11, %p1006_p1 }
  0x4f   : > { %p1009_p12 = pnand %p1008_p10, %p1002_p0 }
  0x51   : > { %1012 = shalt.err (!%p1009_p12)
}
  0x52   : > { %s1491_s16 = smov 8   ;;  %s1492_s20 = smov 128  }
  0x53   : > { %872 = dma.hbm_to_vmem [thread:$0]  (!%p1236_p13), %s1297_s23, 512, %s1300_s28, %s1310_s1, %s1492_s20, %s1492_s20, %s1491_s16  }
  0x54   : > { %s208_s10 = scalar_lea.vmem [#allocation7], %s1229_s29  ;;  %s1013_s22 = scalar_lea.hbm %s1306_s19, 512 }
  0x55   : > { %s215_s5 = sshll.u32 %s208_s10, 4  ;;  %p1014_p11 = scmp.ne.s32.totalorder %s1306_s19, %s1013_s22  ;;  %s1338_s5 = int_to_ptr.vmem [resolvable:$true] %s215_s5 }
  0x56   : > { %s1018_s6 = scalar_lea.hbm %s1465_s2, 2048  ;;  %p1019_p4 = scmp.lt.u32.totalorder %s1306_s19, %s1465_s2 }
  0x57   : > { %p1016_p5 = pnand %p1014_p11, %p1258_p3  ;;  %p1020_p6 = scmp.lt.u32.totalorder %s1018_s6, %s1013_s22 }
  0x58   : > { %p1022_p8 = scmp.lt.u32.totalorder %s1013_s22, %s1306_s19 }
  0x59   : > { %p1017_p2 = pneg %p1016_p5  ;;  %p1021_p7 = por %p1020_p6, %p1019_p4 }
  0x5b   : > { %p1023_p9 = por %p1022_p8, %p1021_p7 }
  0x5d   : > { %p1024_p0 = pnand %p1023_p9, %p1017_p2 }
  0x5f   : > { %1027 = shalt.err (!%p1024_p0)
}
  0x60   : > { %s1028_s1 = scalar_lea.vmem %s1338_s5, 512  ;;  %s1135_s28 = smov [#allocation7]  }
  0x61   : > { %p1029_p1 = scmp.ne.s32.totalorder %s1338_s5, %s1028_s1  ;;  %s1033_s29 = sshll.u32 %s1135_s28, 4  ;;  %s1034_s29 = int_to_ptr.vmem [resolvable:$false] %s1033_s29 }
  0x62   : > { %s1035_s23 = scalar_lea.vmem %s1034_s29, 1024  ;;  %p1036_p11 = scmp.lt.s32.totalorder %s1338_s5, %s1034_s29 }
  0x63   : > { %p1031_p10 = pnand %p1029_p1, %p1258_p3  ;;  %p1037_p5 = scmp.lt.s32.totalorder %s1035_s23, %s1028_s1 }
  0x65   : > { %p1032_p12 = pneg %p1031_p10  ;;  %p1038_p4 = por %p1037_p5, %p1036_p11 }
  0x67   : > { %p1039_p6 = pnand %p1038_p4, %p1032_p12 }
  0x69   : > { %1042 = shalt.err (!%p1039_p6)
}
  0x6a   : > { %878 = dma.hbm_to_vmem [thread:$0]  (!%p1236_p13), %s1306_s19, 512, %s1338_s5, %s1252_s11, %s1492_s20, %s1492_s20, %s1491_s16  }
  0x6b   : > { %p1493_p3 = scmp.ne.s32.totalorder %s1489_s9, 0 }
  0x6c   : > { %s1368_s21 = sand.u32 (!%p1493_p3), 1, %s1113_s13   ;;  %p1494_p2 = scmp.ne.s32.totalorder (!%p1493_p3), %s1480_s24, 0 }
  0x6d   : > { %227 = sbr.rel (%p1493_p3) target bundleno = 903 (0x387), region = 32  ;;  %s1371_s10 = sshll.u32 (!%p1493_p3), %s1368_s21, 5 }
  0x6e   : > { %s230_s4 = scalar_lea.sflag (!%p1493_p3), [#allocation3], %s1368_s21  ;;  %s233_s22 = scalar_lea.vmem (!%p1493_p3), [#allocation2], %s1371_s10 }
  0x74   : > { %1096 = dma.done.wait (%p1494_p2), %s230_s4, 512  }
  0x75   : > { %1098 = vsyncadd (%p1494_p2), %s230_s4, 4294966784  ;;  %s238_s11 = sand.u32 1, %s1190_s18   ;;  %s242_s9 = scalar_lea.vmem [#allocation5], %s1371_s10 }
  0x76   : > { %s239_s19 = scalar_lea.sflag [#allocation6], %s238_s11 }
  0x77   : > { %1100 = dma.done.wait (%p1494_p2), %s239_s19, 1024  }
  0x78   : > { %1102 = vsyncadd (%p1494_p2), %s239_s19, 4294966272  ;;  %vm312_vm0 = vcmask 261120   ;;  %v295_v0 = vld [vmem:[%s242_s9] sm:$0xff]  ;;  %v296_v1 = vld [vmem:[%s242_s9 + $0x8] sm:$0xff]  ;;  %v422_v14 = vlaneseq  ;;  %s251_s18 = scalar_lea.vmem [#allocation7], %s1371_s10  ;;  %s283_s24 = scalar_lea.vmem [#allocation8], %s1371_s10 }
  0x79   : > { %vm842_vm1 = vmpackc.low %vm312_vm0, %vm312_vm0  ;;  %v297_v2 = vld [vmem:[%s242_s9 + $0x10] sm:$0xff]  ;;  %v841_v3 = vpack.c.bf16 %v296_v1, %v295_v0  ;;  %v298_v4 = vld [vmem:[%s242_s9 + $0x18] sm:$0xff]  ;;  %s620_s16 = sshll.u32 %s283_s24, 4  ;;  %s796_s20 = sshll.u32 %s1121_s15, 9  ;;  %s1407_s16 = int_to_ptr.vmem [resolvable:$true] %s620_s16 }
  0x7a   : > { %v304_v5 = vld [vmem:[%s233_s22] sm:$0xff]  ;;  %v847_v6 = vpack.c.bf16 %v298_v4, %v297_v2  ;;  %v305_v8 = vld [vmem:[%s233_s22 + $0x8] sm:$0xff]  ;;  %v306_v9 = vld [vmem:[%s233_s22 + $0x10] sm:$0xff]  ;;  %v423_v15 = vshrl.u32 %v422_v14, 7  ;;  %v428_v17 = vand.u32 127, %v422_v14  ;;  %s1413_s30 = scalar_lea.hbm %s1466_s3, %s796_s20  ;;  %s605_s15 = scalar_lea.sflag [#allocation4], %s1368_s21 }
  0x7b   : > { %v308_v7 = vmul.f32 0.17677669, %v304_v5  ;;  %843 = vmatprep.subr.msk.bf16.mxu0 %vm842_vm1, %v841_v3  ;;  %v309_v10 = vmul.f32 0.17677669, %v305_v8  ;;  %v310_v11 = vmul.f32 0.17677669, %v306_v9 }
  0x7c   : > { %846 = vmatpush3.bf16.xpose.msk.msra.mxu0 %vm842_vm1, %v841_v3  ;;  %v307_v12 = vld [vmem:[%s233_s22 + $0x18] sm:$0xff]  ;;  %v424_v16 = vadd.s32 8, %v423_v15  ;;  %v429_v18 = vshra.s32 %v423_v15, 3  ;;  %v425_v19 = vadd.s32 16, %v423_v15  ;;  %v426_v21 = vadd.s32 24, %v423_v15  ;;  %v300_v61 = vld [vmem:[%s251_s18] sm:$0xff] }
  0x7d   : > { %821 = vmatprep.mubr.msk.f32.mxu0 %vm312_vm0, %v308_v7  ;;  %849 = vmatprep.subr.msk.bf16.mxu0 %vm842_vm1, %v847_v6  ;;  %v311_v13 = vmul.f32 0.17677669, %v307_v12  ;;  %v438_v22 = vshra.s32 %v428_v17, 3  ;;  %v301_v62 = vld [vmem:[%s251_s18 + $0x8] sm:$0xff]  ;;  %v302_v0 = vld [vmem:[%s251_s18 + $0x10] sm:$0xff]  ;;  %v303_v1 = vld [vmem:[%s251_s18 + $0x18] sm:$0xff] }
  0x7e   : > { %v430_v20 = vshra.s32 %v424_v16, 3  ;;  %v780_v23 = vadd.s32 4294967295, %v429_v18  ;;  %v431_v24 = vshra.s32 %v425_v19, 3  ;;  %v432_v26 = vshra.s32 %v426_v21, 3  ;;  %s1043_s6 = scalar_lea.vmem %s1407_s16, 512  ;;  %p1495_p7 = scmp.ne.s32.totalorder %s1481_s25, 0 }
  0x7f   : > { %vm447_vm3 = vcmp.le.s32.totalorder %v438_v22, %v429_v18  ;;  %v853_v63 = vpack.c.bf16 %v301_v62, %v300_v61  ;;  %v857_v2 = vpack.c.bf16 %v303_v1, %v302_v0  ;;  %p1044_p13 = scmp.ne.s32.totalorder %s1407_s16, %s1043_s6  ;;  %s1136_s8 = smov [#allocation8]  }
  0x80   : > { %v781_v25 = vadd.s32 4294967295, %v430_v20  ;;  %vm443_vm2 = vcmp.ge.s32.totalorder %v438_v22, %v780_v23  ;;  %v782_v27 = vadd.s32 4294967295, %v431_v24  ;;  %vm448_vm5 = vcmp.le.s32.totalorder %v438_v22, %v430_v20  ;;  %s1047_s26 = sshll.u32 %s1136_s8, 4  ;;  %s1048_s26 = int_to_ptr.vmem [resolvable:$false] %s1047_s26 }
  0x81   : > { %v783_v28 = vadd.s32 4294967295, %v432_v26  ;;  %vm451_vm6 = vmand %vm443_vm2, %vm447_vm3  ;;  %vm449_vm8 = vcmp.le.s32.totalorder %v438_v22, %v431_v24  ;;  %vm450_vm11 = vcmp.le.s32.totalorder %v438_v22, %v432_v26  ;;  %854 = vmatprep.subr.bf16.mxu1 %v853_v63  ;;  %p1045_p8 = pnand %p1044_p13, %p1495_p7  ;;  %s1049_s1 = scalar_lea.vmem %s1048_s26, 1024 }
  0x82   : > { %vm444_vm4 = vcmp.ge.s32.totalorder %v438_v22, %v781_v25  ;;  %vm445_vm7 = vcmp.ge.s32.totalorder %v438_v22, %v782_v27  ;;  %856 = vmatpush3.bf16.msra.mxu1 %v853_v63  ;;  %p1050_p0 = scmp.lt.s32.totalorder %s1407_s16, %s1048_s26  ;;  %p1051_p1 = scmp.lt.s32.totalorder %s1049_s1, %s1043_s6 }
  0x83   : > { %vm452_vm9 = vmand %vm444_vm4, %vm448_vm5  ;;  %vm446_vm10 = vcmp.ge.s32.totalorder %v438_v22, %v783_v28  ;;  %858 = vmatprep.subr.bf16.mxu1 %v857_v2  ;;  %p1046_p9 = pneg %p1045_p8 }
  0x84   : > { %852 = vmatpush3.bf16.xpose.msk.msra.mxu0 %vm842_vm1, %v847_v6  ;;  %vm453_vm12 = vmand %vm445_vm7, %vm449_vm8  ;;  %p1052_p10 = por %p1051_p1, %p1050_p0 }
  0x85   : > { %vm454_vm13 = vmand %vm446_vm10, %vm450_vm11 }
  0x86   : > { %860 = vmatpush3.bf16.msra.mxu1 %v857_v2  ;;  %p1053_p12 = pnand %p1052_p10, %p1046_p9 }
  0x8b   : > { %822 = vmatmul.mubr.msk.f32.vlgmr.msra.gmra.mrb[0].mxu0 %vm312_vm0, %v309_v10 }
  0x8c   : > { %824 = vmatprep.mubr.msk.f32.mxu0 %vm312_vm0, %v310_v11 }
  0x8f   : > { %825 = vmatmul.mubr.msk.f32.gmra.mrb[2].mxu0 %vm312_vm0, %v311_v13 }
 0x15e   : > { %v823_v29 = vpop.f32.mrb[0].mxu0 }
 0x15f   : > { %v403_v30 = vpop.f32.mrb[1].mxu0  ;;  %v456_v33 = vsel %vm452_vm9, %v823_v29, -3.4028235e+38 }
 0x160   : > { %v455_v31 = vsel %vm451_vm6, %v403_v30, -3.4028235e+38  ;;  %v462_v37 = vsel %vm312_vm0, %v456_v33, -inf }
 0x161   : > { %v459_v32 = vsel %vm312_vm0, %v455_v31, -inf }
 0x162   : > { %460 = vmax.xlane.f32.xlu0 %v459_v32  ;;  %v826_v34 = vpop.f32.mrb[2].mxu0 }
 0x163   : > { %v413_v35 = vpop.f32.mrb[3].mxu0  ;;  %v458_v39 = vsel %vm454_vm13, %v826_v34, -3.4028235e+38 }
 0x164   : > { %v457_v36 = vsel %vm453_vm12, %v413_v35, -3.4028235e+38  ;;  %v468_v40 = vsel %vm312_vm0, %v458_v39, -inf }
 0x165   : > { %v465_v38 = vsel %vm312_vm0, %v457_v36, -inf }
 0x166   : > { %463 = vmax.xlane.f32.xlu0 %v462_v37  ;;  %466 = vmax.xlane.f32.xlu1 %v465_v38 }
 0x16a   : > { %469 = vmax.xlane.f32.xlu1 %v468_v40 }
 0x1ef   : > { %v461_v41 = vpop.xlane.xlu0 %460 }
 0x1f0   : > { %v471_v42 = vsub.f32 %v455_v31, %v461_v41 }
 0x1f2   : > { %v475_v43 = vmul.f32 1.442695, %v471_v42 }
 0x1f3   : > { %v464_v44 = vpop.xlane.xlu0 %463  ;;  %v467_v45 = vpop.xlane.xlu1 %466 }
 0x1f4   : > { %937 = vpow2.f32 %v475_v43  ;;  %v472_v46 = vsub.f32 %v456_v33, %v464_v44  ;;  %v473_v47 = vsub.f32 %v457_v36, %v467_v45 }
 0x1f6   : > { %v477_v48 = vmul.f32 1.442695, %v472_v46  ;;  %v479_v49 = vmul.f32 1.442695, %v473_v47 }
 0x1f7   : > { %v470_v50 = vpop.xlane.xlu1 %469 }
 0x1f8   : > { %939 = vpow2.f32 %v477_v48  ;;  %v474_v51 = vsub.f32 %v458_v39, %v470_v50 }
 0x1f9   : > { %941 = vpow2.f32 %v479_v49 }
 0x1fa   : > { %v481_v52 = vmul.f32 1.442695, %v474_v51 }
 0x1fc   : > { %943 = vpow2.f32 %v481_v52 }
 0x1fe   : > { %v938_v53 = vpop.eup %937 }
 0x1ff   : > { %v483_v54 = vsel %vm312_vm0, %v938_v53, 0.0 }
 0x200   : > { %484 = vadd.xlane.f32.xlu0 %v483_v54 }
 0x202   : > { %v940_v55 = vpop.eup %939 }
 0x203   : > { %v942_v56 = vpop.eup %941  ;;  %v486_v57 = vsel %vm312_vm0, %v940_v55, 0.0 }
 0x204   : > { %487 = vadd.xlane.f32.xlu1 %v486_v57  ;;  %v489_v58 = vsel %vm312_vm0, %v942_v56, 0.0 }
 0x205   : > { %490 = vadd.xlane.f32.xlu0 %v489_v58 }
 0x206   : > { %v944_v59 = vpop.eup %943 }
 0x207   : > { %v492_v60 = vsel %vm312_vm0, %v944_v59, 0.0 }
 0x208   : > { %493 = vadd.xlane.f32.xlu1 %v492_v60 }
 0x28d   : > { %v485_v3 = vpop.xlane.xlu0 %484 }
 0x28e   : > { %945 = vrcp.f32 %v485_v3 }
 0x291   : > { %v488_v4 = vpop.xlane.xlu1 %487 }
 0x292   : > { %v491_v5 = vpop.xlane.xlu0 %490  ;;  %947 = vrcp.f32 %v488_v4 }
 0x293   : > { %949 = vrcp.f32 %v491_v5 }
 0x295   : > { %v494_v6 = vpop.xlane.xlu1 %493 }
 0x296   : > { %951 = vrcp.f32 %v494_v6 }
 0x298   : > { %v946_v7 = vpop.eup %945 }
 0x299   : > { %v499_v8 = vmul.f32 %v946_v7, %v938_v53 }
 0x29b   : > { %835 = vmatprep.mubr.msk.f32.mxu1 %vm312_vm0, %v499_v8 }
 0x29c   : > { %v948_v9 = vpop.eup %947 }
 0x29d   : > { %v950_v10 = vpop.eup %949  ;;  %v500_v11 = vmul.f32 %v948_v9, %v940_v55 }
 0x29e   : > { %v501_v12 = vmul.f32 %v950_v10, %v942_v56 }
 0x29f   : > { %836 = vmatmul.mubr.msk.f32.vlgmr.msra.gmra.mrb[0].mxu1 %vm312_vm0, %v500_v11 }
 0x2a0   : > { %v952_v13 = vpop.eup %951  ;;  %838 = vmatprep.mubr.msk.f32.mxu1 %vm312_vm0, %v501_v12 }
 0x2a1   : > { %v502_v14 = vmul.f32 %v952_v13, %v944_v59 }
 0x2a3   : > { %839 = vmatmul.mubr.msk.f32.gmra.mrb[2].mxu1 %vm312_vm0, %v502_v14 }
 0x372   : > { %v837_v15 = vpop.f32.mrb[0].mxu1 }
 0x373   : > { %601 = vst.msk [vmem:[%s283_s24 + $0x8] sm:$0xff] %vm312_vm0, %v837_v15  ;;  %v581_v16 = vpop.f32.mrb[1].mxu1 }
 0x374   : > { %600 = vst.msk [vmem:[%s283_s24] sm:$0xff] %vm312_vm0, %v581_v16 }
 0x376   : > { %v840_v17 = vpop.f32.mrb[2].mxu1 }
 0x377   : > { %603 = vst.msk [vmem:[%s283_s24 + $0x18] sm:$0xff] %vm312_vm0, %v840_v17  ;;  %v591_v18 = vpop.f32.mrb[3].mxu1 }
 0x378   : > { %602 = vst.msk [vmem:[%s283_s24 + $0x10] sm:$0xff] %vm312_vm0, %v591_v18 }
 0x379   : > { %1056 = shalt.err (!%p1053_p12)
}
 0x37a   : > { %s1057_s28 = scalar_lea.hbm %s1413_s30, 512  ;;  %s1061_s10 = scalar_lea.hbm %s1466_s3, 2048 }
 0x37b   : > { %p1058_p11 = scmp.ne.s32.totalorder %s1413_s30, %s1057_s28  ;;  %p1062_p6 = scmp.lt.u32.totalorder %s1413_s30, %s1466_s3 }
 0x37c   : > { %p1063_p3 = scmp.lt.u32.totalorder %s1061_s10, %s1057_s28  ;;  %p1065_p13 = scmp.lt.u32.totalorder %s1057_s28, %s1413_s30 }
 0x37d   : > { %p1059_p5 = pnand %p1058_p11, %p1495_p7 }
 0x37e   : > { %p1064_p2 = por %p1063_p3, %p1062_p6 }
 0x37f   : > { %p1060_p4 = pneg %p1059_p5 }
 0x380   : > { %p1066_p8 = por %p1065_p13, %p1064_p2 }
 0x382   : > { %p1067_p9 = pnand %p1066_p8, %p1060_p4 }
 0x384   : > { %1070 = shalt.err (!%p1067_p9)
}
 0x385   : > { %s1137_s11 = smov 128   ;;  %s1138_s19 = smov 8  }
 0x386   : > { %867 = dma.vmem_to_hbm [thread:$0]  (%p1495_p7), %s1407_s16, 512, %s1413_s30, %s605_s15, %s1137_s11, %s1137_s11, %s1138_s19  }
 0x387 PF: > { %p884_p0 = scmp.ge.s32.totalorder %s1129_s17, 2  ;;  %s635_s9 = sand.u32 1, %s1109_s12  }
 0x388   : > { %p1496_p1 = scmp.ne.s32.totalorder %s1483_s27, 0  ;;  %s636_s18 = scalar_lea.sflag [#allocation4], %s635_s9 }
 0x38a   : > { %p880_p10 = pnand %p884_p0, %p1496_p1 }
 0x38c   : > { %1104 = dma.done.wait (!%p880_p10), %s636_s18, 512  }
 0x38d   : > { %1106 = vsyncadd (!%p880_p10), %s636_s18, 4294966784  ;;  %s22_s17 = sadd.s32 1, %s1129_s17   ;;  %s1497_s24 = sld [smem:[#allocation14_spill]] }
 0x38e   : > { %p19_p12 = scmp.ge.s32.totalorder %s22_s17, 6   ;;  %s1498_s15 = sld [smem:[#allocation12_spill]] }
 0x38f   : > { %s1499_s16 = sld [smem:[#allocation13_spill]]  ;;  %s1500_s12 = smov %s1113_s13 }
 0x390   : > { %s1501_s13 = smov %s1117_s14  ;;  %21 = sbr.rel (!%p19_p12) target bundleno = 10 (0xa), region = 103 }
 0x393   : > { %s1502_s14 = smov %s1497_s24 }
 0x397   :  { %641 = vsyncpa [#allocation3], 1 }
 0x398   :  { %643 = vsyncpa [#allocation3 + $0x1], 1 }
 0x399   :  { %644 = vsyncpa [#allocation6], 1 }
 0x39a   :  { %646 = vsyncpa [#allocation6 + $0x1], 1 }
 0x39b   :  { %647 = vsyncpa [#allocation4], 1 }
 0x39c   :  { %649 = vsyncpa [#allocation4 + $0x1], 1 }

</bundles_post_ra>
